<compile_context>
chip_gen: v7x
topology: tpu7x:2x2x1
jax: 0.10.0
libtpu: 0.0.40
codegen_flags: <defaults>
</compile_context>

<pallas_src>
from functools import partial

import jax
import jax.numpy as jnp
from jax.experimental import pallas as pl
from jax.experimental.pallas import tpu as pltpu  # noqa: F401  (TPU backend)

LANE = 128  # TPU lane width; head output is padded (once) to this.


def _fused_downstream_kernel(x_ref, w_enc_ref, b_enc_ref, w_out_ref, b_out_ref,
                             o_ref):
    """Single-invocation fused forward (no grid: whole problem fits in VMEM).

    x_ref     : (n, B, D)   per-omics inputs (raw stack, no wrapper reshape)
    w_enc_ref : (n, D, H)   per-omics encoder weights
    b_enc_ref : (n, 1, H)   per-omics encoder biases
    w_out_ref : (n, H, Cp)  downstream head weight, lane-padded to Cp=128
    b_out_ref : (1, Cp)     downstream head bias, lane-padded
    o_ref     : (B, Cp)     lane-dense output (sliced back to C outside)
    """
    num_omics = x_ref.shape[0]
    acc = None
    # Static Python loop over omics: only useful FLOPs, no block-diag zeros.
    for i in range(num_omics):
        h = jnp.dot(x_ref[i], w_enc_ref[i], preferred_element_type=jnp.float32)
        h = jnp.maximum(h + b_enc_ref[i], 0.0)
        contrib = jnp.dot(h, w_out_ref[i], preferred_element_type=jnp.float32)
        acc = contrib if acc is None else acc + contrib
    # Bias add + unmasked lane-dense store.
    o_ref[...] = (acc + b_out_ref[...]).astype(o_ref.dtype)


def pad_head_params(w_out, b_out):
    """One-time (call-invariant) lane-padding of the downstream head.

    Done OUTSIDE the per-call forward so it is never re-executed per step.
    """
    n, H, C = w_out.shape
    c_pad = ((C + LANE - 1) // LANE) * LANE
    w_out_pad = jnp.zeros((n, H, c_pad), w_out.dtype).at[:, :, :C].set(w_out)
    b_out_pad = jnp.zeros((1, c_pad), b_out.dtype).at[:, :C].set(
        b_out.reshape(1, C))
    return w_out_pad, b_out_pad


@partial(jax.jit, static_argnames=("num_classes",))
def explain_downstream_forward(x_stack, w_enc, b_enc, w_out_pad, b_out_pad, *,
                               num_classes):
    """x_stack: (num_omics, B, D) -> outcome logits (B, num_classes)."""
    n, B, D = x_stack.shape
    H = w_enc.shape[-1]
    c_pad = w_out_pad.shape[-1]

    flops = 2 * B * n * (D * H + H * c_pad)
    bytes_accessed = 4 * (x_stack.size + w_enc.size + b_enc.size
                          + w_out_pad.size + b_out_pad.size + B * c_pad)

    out_pad = pl.pallas_call(
        _fused_downstream_kernel,
        out_shape=jax.ShapeDtypeStruct((B, c_pad), jnp.float32),
        cost_estimate=pl.CostEstimate(
            flops=flops, transcendentals=0, bytes_accessed=bytes_accessed),
    )(x_stack, w_enc, b_enc, w_out_pad, b_out_pad)

    # Only post-kernel op: slice the real logits out of the lane-padded tile.
    return out_pad[:, :num_classes]


def _reference(x_stack, w_enc, b_enc, w_out, b_out):
    """Plain-JAX reference of the same synthetic base model."""
    hs = []
    for i in range(x_stack.shape[0]):
        h = jnp.maximum(x_stack[i] @ w_enc[i] + b_enc[i], 0.0)
        hs.append(h)
    h_cat = jnp.concatenate(hs, axis=-1)                        # (B, n*H)
    w_cat = jnp.concatenate([w_out[i] for i in range(w_out.shape[0])], axis=0)
    return h_cat @ w_cat + b_out


if __name__ == "__main__":
    key = jax.random.PRNGKey(0)

    NUM_OMICS = 3   # e.g. expression / methylation / CNV
    B = 8           # batch (multiple of 8 -> sublane-dense output store)
    D = 16          # per-omics input feature dim
    H = 32          # per-omics encoder hidden dim
    C = 4           # downstream outcome dim (logits)

    k = jax.random.split(key, 6)
    x_stack = jax.random.normal(k[0], (NUM_OMICS, B, D), dtype=jnp.float32)
    w_enc = 0.1 * jax.random.normal(k[1], (NUM_OMICS, D, H), dtype=jnp.float32)
    b_enc = 0.1 * jax.random.normal(k[2], (NUM_OMICS, 1, H), dtype=jnp.float32)
    w_out = 0.1 * jax.random.normal(k[3], (NUM_OMICS, H, C), dtype=jnp.float32)
    b_out = 0.1 * jax.random.normal(k[4], (1, C), dtype=jnp.float32)

    # Call-invariant head padding done once, outside the per-call forward.
    w_out_pad, b_out_pad = pad_head_params(w_out, b_out)
    w_out_pad, b_out_pad = jax.block_until_ready((w_out_pad, b_out_pad))

    out = explain_downstream_forward(
        x_stack, w_enc, b_enc, w_out_pad, b_out_pad, num_classes=C)
    out = jax.block_until_ready(out)

    ref = _reference(x_stack, w_enc, b_enc, w_out, b_out)
    assert out.shape == (B, C)
    assert jnp.allclose(out, ref, atol=1e-4, rtol=1e-4), "mismatch vs reference"

    print("KERNEL_OK")
</pallas_src>

<mosaic_0001>
module attributes {stable_mosaic.version = 11 : i64} {
  func.func @_fused_downstream_kernel(%arg0: memref<3x8x16xf32, #tpu.memory_space<vmem>>, %arg1: memref<3x16x32xf32, #tpu.memory_space<vmem>>, %arg2: memref<3x1x32xf32, #tpu.memory_space<vmem>>, %arg3: memref<3x32x128xf32, #tpu.memory_space<vmem>>, %arg4: memref<1x128xf32, #tpu.memory_space<vmem>>, %arg5: memref<8x128xf32, #tpu.memory_space<vmem>>) attributes {dimension_semantics = [], scalar_prefetch = 0 : i64, scratch_operands = 0 : i64, tpu.core_type = #tpu.core_type<tc>} {
    %c0 = arith.constant 0 : index
    %c0_0 = arith.constant 0 : index
    %c0_1 = arith.constant 0 : index
    %0 = vector.load %arg0[%c0, %c0_0, %c0_1] : memref<3x8x16xf32, #tpu.memory_space<vmem>>, vector<1x8x16xf32>
    %1 = vector.shape_cast %0 : vector<1x8x16xf32> to vector<8x16xf32>
    %c0_2 = arith.constant 0 : index
    %c0_3 = arith.constant 0 : index
    %c0_4 = arith.constant 0 : index
    %2 = vector.load %arg1[%c0_2, %c0_3, %c0_4] : memref<3x16x32xf32, #tpu.memory_space<vmem>>, vector<1x16x32xf32>
    %3 = vector.shape_cast %2 : vector<1x16x32xf32> to vector<16x32xf32>
    %cst = arith.constant dense<0.000000e+00> : vector<8x32xf32>
    %4 = tpu.matmul %1, %3, %cst {dimension_numbers = #tpu.dot_dimension_numbers<[1], [0], [0], [1], [0, 0, 1, 1], [], []>} : vector<8x16xf32>, vector<16x32xf32>, vector<8x32xf32> -> vector<8x32xf32>
    %c0_5 = arith.constant 0 : index
    %c0_6 = arith.constant 0 : index
    %c0_7 = arith.constant 0 : index
    %5 = vector.load %arg2[%c0_5, %c0_6, %c0_7] : memref<3x1x32xf32, #tpu.memory_space<vmem>>, vector<1x1x32xf32>
    %6 = vector.shape_cast %5 : vector<1x1x32xf32> to vector<1x32xf32>
    %7 = vector.broadcast %6 : vector<1x32xf32> to vector<8x32xf32>
    %8 = arith.addf %4, %7 : vector<8x32xf32>
    %cst_8 = arith.constant 0.000000e+00 : f32
    %9 = vector.broadcast %cst_8 : f32 to vector<8x32xf32>
    %10 = arith.maximumf %8, %9 : vector<8x32xf32>
    %c0_9 = arith.constant 0 : index
    %c0_10 = arith.constant 0 : index
    %c0_11 = arith.constant 0 : index
    %11 = vector.load %arg3[%c0_9, %c0_10, %c0_11] : memref<3x32x128xf32, #tpu.memory_space<vmem>>, vector<1x32x128xf32>
    %12 = vector.shape_cast %11 : vector<1x32x128xf32> to vector<32x128xf32>
    %cst_12 = arith.constant dense<0.000000e+00> : vector<8x128xf32>
    %13 = tpu.matmul %10, %12, %cst_12 {dimension_numbers = #tpu.dot_dimension_numbers<[1], [0], [0], [1], [0, 0, 1, 1], [], []>} : vector<8x32xf32>, vector<32x128xf32>, vector<8x128xf32> -> vector<8x128xf32>
    %c1 = arith.constant 1 : index
    %c0_13 = arith.constant 0 : index
    %c0_14 = arith.constant 0 : index
    %14 = vector.load %arg0[%c1, %c0_13, %c0_14] : memref<3x8x16xf32, #tpu.memory_space<vmem>>, vector<1x8x16xf32>
    %15 = vector.shape_cast %14 : vector<1x8x16xf32> to vector<8x16xf32>
    %c1_15 = arith.constant 1 : index
    %c0_16 = arith.constant 0 : index
    %c0_17 = arith.constant 0 : index
    %16 = vector.load %arg1[%c1_15, %c0_16, %c0_17] : memref<3x16x32xf32, #tpu.memory_space<vmem>>, vector<1x16x32xf32>
    %17 = vector.shape_cast %16 : vector<1x16x32xf32> to vector<16x32xf32>
    %cst_18 = arith.constant dense<0.000000e+00> : vector<8x32xf32>
    %18 = tpu.matmul %15, %17, %cst_18 {dimension_numbers = #tpu.dot_dimension_numbers<[1], [0], [0], [1], [0, 0, 1, 1], [], []>} : vector<8x16xf32>, vector<16x32xf32>, vector<8x32xf32> -> vector<8x32xf32>
    %c1_19 = arith.constant 1 : index
    %c0_20 = arith.constant 0 : index
    %c0_21 = arith.constant 0 : index
    %19 = vector.load %arg2[%c1_19, %c0_20, %c0_21] : memref<3x1x32xf32, #tpu.memory_space<vmem>>, vector<1x1x32xf32>
    %20 = vector.shape_cast %19 : vector<1x1x32xf32> to vector<1x32xf32>
    %21 = vector.broadcast %20 : vector<1x32xf32> to vector<8x32xf32>
    %22 = arith.addf %18, %21 : vector<8x32xf32>
    %cst_22 = arith.constant 0.000000e+00 : f32
    %23 = vector.broadcast %cst_22 : f32 to vector<8x32xf32>
    %24 = arith.maximumf %22, %23 : vector<8x32xf32>
    %c1_23 = arith.constant 1 : index
    %c0_24 = arith.constant 0 : index
    %c0_25 = arith.constant 0 : index
    %25 = vector.load %arg3[%c1_23, %c0_24, %c0_25] : memref<3x32x128xf32, #tpu.memory_space<vmem>>, vector<1x32x128xf32>
    %26 = vector.shape_cast %25 : vector<1x32x128xf32> to vector<32x128xf32>
    %cst_26 = arith.constant dense<0.000000e+00> : vector<8x128xf32>
    %27 = tpu.matmul %24, %26, %cst_26 {dimension_numbers = #tpu.dot_dimension_numbers<[1], [0], [0], [1], [0, 0, 1, 1], [], []>} : vector<8x32xf32>, vector<32x128xf32>, vector<8x128xf32> -> vector<8x128xf32>
    %28 = arith.addf %13, %27 : vector<8x128xf32>
    %c2 = arith.constant 2 : index
    %c0_27 = arith.constant 0 : index
    %c0_28 = arith.constant 0 : index
    %29 = vector.load %arg0[%c2, %c0_27, %c0_28] : memref<3x8x16xf32, #tpu.memory_space<vmem>>, vector<1x8x16xf32>
    %30 = vector.shape_cast %29 : vector<1x8x16xf32> to vector<8x16xf32>
    %c2_29 = arith.constant 2 : index
    %c0_30 = arith.constant 0 : index
    %c0_31 = arith.constant 0 : index
    %31 = vector.load %arg1[%c2_29, %c0_30, %c0_31] : memref<3x16x32xf32, #tpu.memory_space<vmem>>, vector<1x16x32xf32>
    %32 = vector.shape_cast %31 : vector<1x16x32xf32> to vector<16x32xf32>
    %cst_32 = arith.constant dense<0.000000e+00> : vector<8x32xf32>
    %33 = tpu.matmul %30, %32, %cst_32 {dimension_numbers = #tpu.dot_dimension_numbers<[1], [0], [0], [1], [0, 0, 1, 1], [], []>} : vector<8x16xf32>, vector<16x32xf32>, vector<8x32xf32> -> vector<8x32xf32>
    %c2_33 = arith.constant 2 : index
    %c0_34 = arith.constant 0 : index
    %c0_35 = arith.constant 0 : index
    %34 = vector.load %arg2[%c2_33, %c0_34, %c0_35] : memref<3x1x32xf32, #tpu.memory_space<vmem>>, vector<1x1x32xf32>
    %35 = vector.shape_cast %34 : vector<1x1x32xf32> to vector<1x32xf32>
    %36 = vector.broadcast %35 : vector<1x32xf32> to vector<8x32xf32>
    %37 = arith.addf %33, %36 : vector<8x32xf32>
    %cst_36 = arith.constant 0.000000e+00 : f32
    %38 = vector.broadcast %cst_36 : f32 to vector<8x32xf32>
    %39 = arith.maximumf %37, %38 : vector<8x32xf32>
    %c2_37 = arith.constant 2 : index
    %c0_38 = arith.constant 0 : index
    %c0_39 = arith.constant 0 : index
    %40 = vector.load %arg3[%c2_37, %c0_38, %c0_39] : memref<3x32x128xf32, #tpu.memory_space<vmem>>, vector<1x32x128xf32>
    %41 = vector.shape_cast %40 : vector<1x32x128xf32> to vector<32x128xf32>
    %cst_40 = arith.constant dense<0.000000e+00> : vector<8x128xf32>
    %42 = tpu.matmul %39, %41, %cst_40 {dimension_numbers = #tpu.dot_dimension_numbers<[1], [0], [0], [1], [0, 0, 1, 1], [], []>} : vector<8x32xf32>, vector<32x128xf32>, vector<8x128xf32> -> vector<8x128xf32>
    %43 = arith.addf %28, %42 : vector<8x128xf32>
    %c0_41 = arith.constant 0 : index
    %c0_42 = arith.constant 0 : index
    %44 = vector.load %arg4[%c0_41, %c0_42] : memref<1x128xf32, #tpu.memory_space<vmem>>, vector<1x128xf32>
    %45 = vector.broadcast %44 : vector<1x128xf32> to vector<8x128xf32>
    %46 = arith.addf %43, %45 : vector<8x128xf32>
    %c0_43 = arith.constant 0 : index
    %c0_44 = arith.constant 0 : index
    %47 = vector.load %arg5[%c0_43, %c0_44] : memref<8x128xf32, #tpu.memory_space<vmem>>, vector<8x128xf32>
    tpu.vector_store %arg5[%c0_43, %c0_44], %46 {strides = array<i32>} : memref<8x128xf32, #tpu.memory_space<vmem>>, vector<8x128xf32>,
    return
  }
}

</mosaic_0001>

<bundles_post_ra>
// kernel: explain_downstream_forward.1
= control target key start
LH: loop header
LB: loop body
LE: loop exit
PB: predicated region body
PF: predicated region fallthrough
CT: control target
= control target key end

     0   :  { %10 = vsyncpa [#allocation3], 0  ;;  %s891_s0 = inlined_call_operand.hbm [shape: f32[3,8,16], index: 0, kind: input, shape index: {}]   ;;  %s892_s1 = inlined_call_operand.hbm [shape: f32[3,16,32], index: 1, kind: input, shape index: {}]   ;;  %s893_s2 = inlined_call_operand.vmem [shape: f32[3,1,32], index: 2, kind: input, shape index: {}]   ;;  %s894_s3 = inlined_call_operand.hbm [shape: f32[3,32,128], index: 3, kind: input, shape index: {}]   ;;  %s895_s4 = inlined_call_operand.vmem [shape: f32[1,128], index: 4, kind: input, shape index: {}]   ;;  %s896_s5 = inlined_call_operand.vmem [shape: f32[8,128], index: 5, kind: output, shape index: {}]  }
   0x1   :  { %11 = vsyncpa [#allocation5], 0  ;;  %s765_s18 = smov [#allocation4]   ;;  %s766_s20 = smov [#allocation2]  }
   0x2   :  { %s29_s19 = sshll.u32 %s765_s18, 4  ;;  %s17_s21 = sshll.u32 %s766_s20, 4  ;;  %s30_s19 = int_to_ptr.vmem [resolvable:$true] %s29_s19  ;;  %s803_s21 = int_to_ptr.vmem [resolvable:$true] %s17_s21 }
   0x3   :  { %s695_s24 = scalar_lea.hbm %s892_s1, 768 }
   0x4   :  { %p696_p0 = scmp.ne.s32.totalorder %s892_s1, %s695_s24  ;;  %p699_p1 = scmp.lt.u32.totalorder %s695_s24, %s892_s1 }
   0x6   :  { %p701_p2 = pnand %p699_p1, %p696_p0 }
   0x8   :  { %704 = shalt.err (!%p701_p2)
}
   0x9   :  { %s705_s29 = scalar_lea.vmem %s30_s19, 768  ;;  %p710_p4 = scmp.lt.s32.totalorder %s30_s19, %s30_s19 }
   0xa   :  { %p706_p3 = scmp.ne.s32.totalorder %s30_s19, %s705_s29  ;;  %p711_p5 = scmp.lt.s32.totalorder %s705_s29, %s705_s29 }
   0xc   :  { %p712_p6 = por %p711_p5, %p710_p4 }
   0xe   :  { %p713_p7 = pnand %p712_p6, %p706_p3 }
  0x10   :  { %716 = shalt.err (!%p713_p7)
}
  0x11   :  { %s767_s30 = smov 128   ;;  %s768_s6 = smov 8  }
  0x12   :  { %35 = dma.hbm_to_vmem [thread:$0]  %s892_s1, 768, %s30_s19, [#allocation5], %s767_s30, %s767_s30, %s768_s6  }
  0x13   :  { %s717_s11 = scalar_lea.hbm %s891_s0, 384 }
  0x14   :  { %p718_p8 = scmp.ne.s32.totalorder %s891_s0, %s717_s11  ;;  %p721_p9 = scmp.lt.u32.totalorder %s717_s11, %s891_s0 }
  0x16   :  { %p723_p10 = pnand %p721_p9, %p718_p8 }
  0x18   :  { %726 = shalt.err (!%p723_p10)
}
  0x19   :  { %s727_s16 = scalar_lea.vmem %s803_s21, 384  ;;  %p732_p12 = scmp.lt.s32.totalorder %s803_s21, %s803_s21 }
  0x1a   :  { %p728_p11 = scmp.ne.s32.totalorder %s803_s21, %s727_s16  ;;  %p733_p13 = scmp.lt.s32.totalorder %s727_s16, %s727_s16 }
  0x1c   :  { %p734_p0 = por %p733_p13, %p732_p12 }
  0x1e   :  { %p735_p1 = pnand %p734_p0, %p728_p11 }
  0x20   :  { %738 = shalt.err (!%p735_p1)
}
  0x21   :  { %23 = dma.hbm_to_vmem [thread:$0]  %s891_s0, 384, %s803_s21, [#allocation3], %s767_s30, %s767_s30, %s768_s6  }
  0x22   :  { %s769_s18 = smov [#allocation6]   ;;  %s739_s23 = scalar_lea.hbm %s894_s3, 1536 }
  0x23   :  { %s43_s19 = sshll.u32 %s769_s18, 4  ;;  %p740_p2 = scmp.ne.s32.totalorder %s894_s3, %s739_s23  ;;  %s44_s19 = int_to_ptr.vmem [resolvable:$true] %s43_s19 }
  0x24   :  { %p743_p3 = scmp.lt.u32.totalorder %s739_s23, %s894_s3 }
  0x26   :  { %p745_p4 = pnand %p743_p3, %p740_p2 }
  0x28   :  { %748 = shalt.err (!%p745_p4)
}
  0x29   :  { %s749_s28 = scalar_lea.vmem %s44_s19, 1536  ;;  %p754_p6 = scmp.lt.s32.totalorder %s44_s19, %s44_s19 }
  0x2a   :  { %p750_p5 = scmp.ne.s32.totalorder %s44_s19, %s749_s28  ;;  %p755_p7 = scmp.lt.s32.totalorder %s749_s28, %s749_s28 }
  0x2c   :  { %p756_p8 = por %p755_p7, %p754_p6 }
  0x2e   :  { %p757_p9 = pnand %p756_p8, %p750_p5 }
  0x30   :  { %760 = shalt.err (!%p757_p9)
}
  0x31   :  { %49 = dma.hbm_to_vmem [thread:$0]  %s894_s3, 1536, %s44_s19, [#allocation5], %s767_s30, %s767_s30, %s768_s6  }
  0x32   :  { %761 = dma.done.wait [#allocation3], 384  }
  0x33   :  { %762 = vsyncadd [#allocation3], 4294966912 }
  0x34   :  { %763 = dma.done.wait [#allocation5], 2304  }
  0x35   :  { %764 = vsyncadd [#allocation5], 4294964992  ;;  %v770_v0 = vmov 0.0|0.0   ;;  %vm771_vm0 = vmmov 0   ;;  %v772_v1 = vmov 0.0   ;;  %v62_v2 = vld [vmem:[#allocation4] sm:$0xff] }
  0x36   :  { %660 = vmatprep.subr.bf16.mxu0 %v770_v0  ;;  %663 = vmatprep.subr.bf16.mxu1 %v770_v0  ;;  %v63_v3 = vld [vmem:[#allocation4 + $0x8] sm:$0xff]  ;;  %v153_v4 = vld [vmem:[#allocation4 + $0x10] sm:$0xff]  ;;  %v154_v6 = vld [vmem:[#allocation4 + $0x18] sm:$0xff]  ;;  %vm71_vm1 = vcmask 130048   ;;  %vm242_vm2 = vcmask 261120  }
  0x37   :  { %610 = vmatprep.mubr.msk.f32.mxu0 %vm771_vm0, %v772_v1  ;;  %617 = vmatprep.mubr.msk.f32.mxu1 %vm771_vm0, %v772_v1  ;;  %v661_v5 = vpack.c.bf16 %v63_v3, %v62_v2  ;;  %v664_v7 = vpack.c.bf16 %v154_v6, %v153_v4  ;;  %v238_v8 = vld [vmem:[#allocation6 + $0x20] sm:$0xff]  ;;  %v239_v9 = vld [vmem:[#allocation6 + $0x28] sm:$0xff]  ;;  %v61_v11 = vld [vmem:[#allocation2] sm:$0xff] }
  0x38   :  { %v146_v10 = vld [vmem:[#allocation6] sm:$0xff]  ;;  %v667_v12 = vpack.c.bf16 %v239_v9, %v238_v8  ;;  %v147_v13 = vld [vmem:[#allocation6 + $0x8] sm:$0xff]  ;;  %v240_v16 = vld [vmem:[#allocation6 + $0x30] sm:$0xff] }
  0x39   :  { %662 = vmatpush3.bf16.msra.mxu0 %v661_v5  ;;  %665 = vmatpush3.bf16.msra.mxu1 %v664_v7  ;;  %v151_v14 = vld [vmem:[#allocation2 + $0x8] sm:$0xff]  ;;  %v673_v15 = vpack.c.bf16 %v147_v13, %v146_v10  ;;  %v241_v17 = vld [vmem:[#allocation6 + $0x38] sm:$0xff]  ;;  %v148_v18 = vld [vmem:[#allocation6 + $0x10] sm:$0xff] }
  0x3a   :  { %666 = vmatprep.subr.bf16.mxu0 %v770_v0  ;;  %672 = vmatprep.subr.bf16.mxu1 %v770_v0  ;;  %v670_v19 = vpack.c.bf16 %v241_v17, %v240_v16  ;;  %v149_v20 = vld [vmem:[#allocation6 + $0x18] sm:$0xff]  ;;  %v392_v25 = vld [vmem:[#allocation4 + $0x20] sm:$0xff]  ;;  %v390_v35 = vld [vmem:[#allocation2 + $0x10] sm:$0xff] }
  0x3b   :  { %v676_v21 = vpack.c.bf16 %v149_v20, %v148_v18  ;;  %v570_v22 = vld [vmem:[%s893_s2] ss:$0 sm:$0xff]  ;;  %v573_v23 = vld [vmem:[%s893_s2 + $0x1] ss:$0 sm:$0xff]  ;;  %v477_v36 = vld [vmem:[#allocation6 + $0x40] sm:$0xff] }
  0x3c   :  { %611 = vmatmul.mubr.msk.f32.vlgmr.msra.gmra.mrb[0].mxu0 %vm71_vm1, %v61_v11  ;;  %618 = vmatmul.mubr.msk.f32.vlgmr.msra.gmra.mrb[0].mxu1 %vm71_vm1, %v151_v14  ;;  %v393_v26 = vld [vmem:[#allocation4 + $0x28] sm:$0xff]  ;;  %v478_v37 = vld [vmem:[#allocation6 + $0x48] sm:$0xff]  ;;  %v479_v39 = vld [vmem:[#allocation6 + $0x50] sm:$0xff] }
  0x3d   :  { %668 = vmatpush3.bf16.msra.mxu0 %v667_v12  ;;  %674 = vmatpush3.bf16.msra.mxu1 %v673_v15  ;;  %v679_v33 = vpack.c.bf16 %v393_v26, %v392_v25  ;;  %v682_v38 = vpack.c.bf16 %v478_v37, %v477_v36  ;;  %v480_v40 = vld [vmem:[#allocation6 + $0x58] sm:$0xff] }
  0x3e   :  { %669 = vmatprep.subr.bf16.mxu0 %v770_v0  ;;  %675 = vmatprep.subr.bf16.mxu1 %v770_v0  ;;  %v685_v41 = vpack.c.bf16 %v480_v40, %v479_v39  ;;  %v578_v47 = vld [vmem:[%s893_s2 + $0x2] ss:$0 sm:$0xff]  ;;  %v581_v53 = vld [vmem:[%s895_s4] ss:$0 sm:$0xff] }
  0x3f   :  { %628 = vmatprep.mubr.msk.f32.mxu0 %vm771_vm0, %v772_v1  ;;  %639 = vmatprep.mubr.msk.f32.mxu1 %vm771_vm0, %v772_v1 }
  0x41   :  { %671 = vmatpush3.bf16.msra.mxu0 %v670_v19  ;;  %677 = vmatpush3.bf16.msra.mxu1 %v676_v21 }
  0x42   :  { %678 = vmatprep.subr.bf16.mxu0 %v770_v0  ;;  %681 = vmatprep.subr.bf16.mxu1 %v770_v0 }
 0x10f   :  { %v141_v24 = vpop.f32.mrb[0].mxu0  ;;  %v232_v28 = vpop.f32.mrb[0].mxu1 }
 0x110   :  { %v142_v27 = vadd.f32 %v570_v22, %v141_v24  ;;  %v612_v29 = vpop.f32.mrb[1].mxu0  ;;  %v233_v30 = vadd.f32 %v573_v23, %v232_v28  ;;  %v619_v31 = vpop.f32.mrb[1].mxu1 }
 0x112   :  { %v145_v32 = vmax.f32 %v142_v27, 0.0  ;;  %v236_v34 = vmax.f32 %v233_v30, 0.0 }
 0x114   :  { %640 = vmatmul.mubr.msk.f32.vlgmr.msra.gmra.mrb[2].mxu1 %vm242_vm2, %v145_v32  ;;  %629 = vmatmul.mubr.msk.f32.vlgmr.msra.gmra.mrb[2].mxu0 %vm242_vm2, %v236_v34 }
 0x115   :  { %657 = vmatprep.mubr.msk.f32.mxu1 %vm771_vm0, %v772_v1  ;;  %680 = vmatpush3.bf16.msra.mxu0 %v679_v33 }
 0x116   :  { %646 = vmatprep.mubr.msk.f32.mxu0 %vm771_vm0, %v772_v1  ;;  %683 = vmatpush3.bf16.msra.mxu1 %v682_v38 }
 0x117   :  { %684 = vmatprep.subr.bf16.mxu1 %v770_v0 }
 0x118   :  { %647 = vmatmul.mubr.msk.f32.vlgmr.msra.gmra.mrb[4].mxu0 %vm71_vm1, %v390_v35 }
 0x11a   :  { %686 = vmatpush3.bf16.msra.mxu1 %v685_v41 }
 0x1e7   :  { %v385_v42 = vpop.f32.mrb[2].mxu1  ;;  %v312_v43 = vpop.f32.mrb[2].mxu0 }
 0x1e8   :  { %v641_v44 = vpop.f32.mrb[3].mxu1  ;;  %v386_v45 = vadd.f32 %v385_v42, %v312_v43  ;;  %v630_v46 = vpop.f32.mrb[3].mxu0 }
 0x1eb   :  { %v471_v48 = vpop.f32.mrb[4].mxu0 }
 0x1ec   :  { %v472_v49 = vadd.f32 %v578_v47, %v471_v48  ;;  %v648_v50 = vpop.f32.mrb[5].mxu0 }
 0x1ee   :  { %v475_v51 = vmax.f32 %v472_v49, 0.0 }
 0x1f0   :  { %658 = vmatmul.mubr.msk.f32.vlgmr.msra.gmra.mrb[4].mxu1 %vm242_vm2, %v475_v51 }
 0x2c3   :  { %v550_v52 = vpop.f32.mrb[4].mxu1 }
 0x2c4   :  { %v554_v54 = vadd.f32 %v550_v52, %v386_v45  ;;  %v659_v55 = vpop.f32.mrb[5].mxu1 }
 0x2c6   :  { %v562_v56 = vadd.f32 %v581_v53, %v554_v54 }
 0x2c8   :  { %563 = vst [vmem:[%s896_s5] sm:$0xff] %v562_v56 }
 0x2c9   :  { %568 = vsyncpa [#allocation3], 1 }
 0x2ca   :  { %569 = vsyncpa [#allocation5], 1 }

</bundles_post_ra>
